<compile_context>
chip_gen: v7x
topology: tpu7x:2x2x1
jax: 0.10.0
libtpu: 0.0.40
codegen_flags: <defaults>
</compile_context>

<pallas_src>
import functools

import jax
import jax.numpy as jnp
from jax.experimental import pallas as pl
from jax.experimental.pallas import tpu as pltpu


def gated_attn_kernel(x_ref, wab_ref, bab_ref, wc_ref, bc_ref, A_ref, *, d_hidden):
    """One grid step processes a (tile, L) slab of instances end-to-end."""
    x = x_ref[...]                                                   # (tile, L)

    # Fused attention_a / attention_b projection: ONE MXU pass (tile,L)x(L,2Dp),
    # accumulated in f32; f32 bias added post-accumulation.
    ab = (
        jnp.dot(x, wab_ref[...], preferred_element_type=jnp.float32)
        + bab_ref[...]
    )                                                                # (tile, 2Dp) f32

    # d_hidden is a multiple of 128, so these slices are lane-tile aligned.
    a = jnp.tanh(ab[:, :d_hidden])                                   # (tile, Dp) EUP
    g = jax.nn.sigmoid(ab[:, d_hidden:])                             # (tile, Dp) EUP
    gated = (a * g).astype(wc_ref.dtype)                             # cast for MXU

    # attention_c: Linear(Dp, n_classes), f32 accumulation + f32 bias.
    A = (
        jnp.dot(gated, wc_ref[...], preferred_element_type=jnp.float32)
        + bc_ref[...]
    )                                                                # (tile, C)
    A_ref[...] = A.astype(A_ref.dtype)


def _round_up(n, m):
    return ((n + m - 1) // m) * m


def attn_net_gated(x, wa, ba, wb, bb, wc, bc, *, tn=1024, compute_dtype=None):
    """Pallas wrapper.

    x: [N, L]; wa/wb: [L, D]; wc: [D, C]; biases [1, *].
    tn: max instance tile (rows per grid step); actual tile is a multiple of 8
        capped by tn and shrunk for small bags.
    compute_dtype: dtype of the matmul operands (e.g. jnp.bfloat16 on v6e/v7x
        for the fast MXU path). Accumulation and elementwise math stay f32.
    """
    N, L = x.shape
    D = wa.shape[1]
    C = wc.shape[1]
    if compute_dtype is None:
        compute_dtype = x.dtype

    # --- parameter prep (wrapper-side, one-time glue) -----------------------
    # Pad hidden dim to a 128-lane multiple so the in-kernel half split is
    # vreg-aligned. Exact: tanh(0)*sigmoid(0) = 0 and Wc pad rows are zero.
    Dp = _round_up(D, 128)
    if Dp != D:
        wa = jnp.pad(wa, ((0, 0), (0, Dp - D)))
        wb = jnp.pad(wb, ((0, 0), (0, Dp - D)))
        ba = jnp.pad(ba, ((0, 0), (0, Dp - D)))
        bb = jnp.pad(bb, ((0, 0), (0, Dp - D)))
        wc_p = jnp.pad(wc, ((0, Dp - D), (0, 0)))
    else:
        wc_p = wc

    # Fuse the two hidden projections into a single [L, 2*Dp] weight.
    wab = jnp.concatenate([wa, wb], axis=1).astype(compute_dtype)    # (L, 2Dp)
    bab = jnp.concatenate([ba, bb], axis=1).astype(jnp.float32)      # (1, 2Dp)
    wc_c = wc_p.astype(compute_dtype)                                # (Dp, C)
    bc_c = bc.astype(jnp.float32)                                    # (1, C)
    x_c = x.astype(compute_dtype)

    # --- tiling: large tile, multiple of 8, ragged-N handled by padding -----
    tile = max(8, min(_round_up(tn, 8), _round_up(N, 8)))
    n_pad = pl.cdiv(N, tile) * tile
    if n_pad != N:
        x_c = jnp.pad(x_c, ((0, n_pad - N), (0, 0)))
    grid = (n_pad // tile,)

    A = pl.pallas_call(
        functools.partial(gated_attn_kernel, d_hidden=Dp),
        out_shape=jax.ShapeDtypeStruct((n_pad, C), jnp.float32),
        grid_spec=pltpu.PrefetchScalarGridSpec(
            num_scalar_prefetch=0,
            grid=grid,
            in_specs=[
                pl.BlockSpec((tile, L), lambda i: (i, 0)),    # x tile
                pl.BlockSpec((L, 2 * Dp), lambda i: (0, 0)),  # fused Wa|Wb (resident)
                pl.BlockSpec((1, 2 * Dp), lambda i: (0, 0)),  # fused ba|bb
                pl.BlockSpec((Dp, C), lambda i: (0, 0)),      # Wc
                pl.BlockSpec((1, C), lambda i: (0, 0)),       # bc
            ],
            out_specs=pl.BlockSpec((tile, C), lambda i: (i, 0)),
        ),
        compiler_params=pltpu.CompilerParams(
            dimension_semantics=("parallel",),   # megacore-shardable on v7x
            vmem_limit_bytes=48 * 1024 * 1024,   # headroom for f32 @ tile=1024
        ),
    )(x_c, wab, bab, wc_c, bc_c)

    if n_pad != N:
        A = A[:N]

    # Module returns (A, x); x pass-through is glue, no kernel work needed.
    return A, x


def _reference(x, wa, ba, wb, bb, wc, bc):
    a = jnp.tanh(x @ wa + ba)
    b = jax.nn.sigmoid(x @ wb + bb)
    return (a * b) @ wc + bc


if __name__ == "__main__":
    # Small, module-consistent shapes: N instances of L-dim features.
    N, L, D, C = 16, 64, 32, 1   # (L=1024, D=256 in the original; scaled down)

    key = jax.random.PRNGKey(0)
    kx, kwa, kba, kwb, kbb, kwc, kbc = jax.random.split(key, 7)

    x = jax.random.normal(kx, (N, L), dtype=jnp.float32)

    # Deterministic synthetic parameters (nn.Linear shapes, stored transposed).
    wa = jax.random.normal(kwa, (L, D), dtype=jnp.float32) * 0.05
    ba = jax.random.normal(kba, (1, D), dtype=jnp.float32) * 0.05
    wb = jax.random.normal(kwb, (L, D), dtype=jnp.float32) * 0.05
    bb = jax.random.normal(kbb, (1, D), dtype=jnp.float32) * 0.05
    wc = jax.random.normal(kwc, (D, C), dtype=jnp.float32) * 0.05
    bc = jax.random.normal(kbc, (1, C), dtype=jnp.float32) * 0.05

    A_ref = _reference(x, wa, ba, wb, bb, wc, bc)

    # --- f32 path (exact module semantics) ----------------------------------
    A, x_out = attn_net_gated(x, wa, ba, wb, bb, wc, bc)
    A = jax.block_until_ready(A)
    x_out = jax.block_until_ready(x_out)
    assert A.shape == (N, C)
    assert x_out.shape == (N, L)
    assert jnp.allclose(A, A_ref, atol=1e-5, rtol=1e-5)
    assert jnp.array_equal(x_out, x)

    # --- multi-step grid + ragged-N path (padding exercised) ----------------
    N2 = 50
    x2 = jax.random.normal(jax.random.PRNGKey(1), (N2, L), dtype=jnp.float32)
    A2_ref = _reference(x2, wa, ba, wb, bb, wc, bc)
    A2, _ = attn_net_gated(x2, wa, ba, wb, bb, wc, bc, tn=16)
    A2 = jax.block_until_ready(A2)
    assert A2.shape == (N2, C)
    assert jnp.allclose(A2, A2_ref, atol=1e-5, rtol=1e-5)

    # --- bf16-operand path (fast MXU path on v6e/v7x; f32 accumulation) -----
    A_bf16, _ = attn_net_gated(
        x, wa, ba, wb, bb, wc, bc, compute_dtype=jnp.bfloat16
    )
    A_bf16 = jax.block_until_ready(A_bf16)
    assert jnp.allclose(A_bf16, A_ref, atol=3e-2, rtol=5e-2)

    # TODO(synk): dropout=True (p=0.25) training path not implemented; the
    # module's inference forward (dropout disabled) is what this kernel covers.
    print("KERNEL_OK")
</pallas_src>

<mosaic_0001>
module attributes {stable_mosaic.version = 11 : i64} {
  func.func @gated_attn_kernel(%arg0: i32, %arg1: memref<16x64xf32, #tpu.memory_space<vmem>>, %arg2: memref<64x256xf32, #tpu.memory_space<vmem>>, %arg3: memref<1x256xf32, #tpu.memory_space<vmem>>, %arg4: memref<128x1xf32, #tpu.memory_space<vmem>>, %arg5: memref<1x1xf32, #tpu.memory_space<vmem>>, %arg6: memref<16x1xf32, #tpu.memory_space<vmem>>) attributes {dimension_semantics = [#tpu.dimension_semantics<parallel>], iteration_bounds = array<i64: 1>, scalar_prefetch = 0 : i64, scratch_operands = 0 : i64, tpu.core_type = #tpu.core_type<tc>, window_params = [{transform_indices = @transform_0, window_bounds = array<i64: 16, 64>}, {pipeline_mode = #tpu.pipeline_mode<synchronous>, transform_indices = @transform_1, window_bounds = array<i64: 64, 256>}, {pipeline_mode = #tpu.pipeline_mode<synchronous>, transform_indices = @transform_2, window_bounds = array<i64: 1, 256>}, {pipeline_mode = #tpu.pipeline_mode<synchronous>, transform_indices = @transform_3, window_bounds = array<i64: 128, 1>}, {pipeline_mode = #tpu.pipeline_mode<synchronous>, transform_indices = @transform_4, window_bounds = array<i64: 1, 1>}, {transform_indices = @transform_5, window_bounds = array<i64: 16, 1>}]} {
    %c0 = arith.constant 0 : index
    %c0_0 = arith.constant 0 : index
    %0 = vector.load %arg1[%c0, %c0_0] : memref<16x64xf32, #tpu.memory_space<vmem>>, vector<16x64xf32>
    %c0_1 = arith.constant 0 : index
    %c0_2 = arith.constant 0 : index
    %1 = vector.load %arg2[%c0_1, %c0_2] : memref<64x256xf32, #tpu.memory_space<vmem>>, vector<64x256xf32>
    %cst = arith.constant dense<0.000000e+00> : vector<16x256xf32>
    %2 = tpu.matmul %0, %1, %cst {dimension_numbers = #tpu.dot_dimension_numbers<[1], [0], [0], [1], [0, 0, 1, 1], [], []>} : vector<16x64xf32>, vector<64x256xf32>, vector<16x256xf32> -> vector<16x256xf32>
    %c0_3 = arith.constant 0 : index
    %c0_4 = arith.constant 0 : index
    %3 = vector.load %arg3[%c0_3, %c0_4] : memref<1x256xf32, #tpu.memory_space<vmem>>, vector<1x256xf32>
    %4 = vector.broadcast %3 : vector<1x256xf32> to vector<16x256xf32>
    %5 = arith.addf %2, %4 : vector<16x256xf32>
    %6 = vector.extract_strided_slice %5 {offsets = [0, 0], sizes = [16, 128], strides = [1, 1]} : vector<16x256xf32> to vector<16x128xf32>
    %7 = math.tanh %6 : vector<16x128xf32>
    %8 = vector.extract_strided_slice %5 {offsets = [0, 128], sizes = [16, 128], strides = [1, 1]} : vector<16x256xf32> to vector<16x128xf32>
    %9 = arith.negf %8 : vector<16x128xf32>
    %10 = math.exp %9 : vector<16x128xf32>
    %cst_5 = arith.constant 1.000000e+00 : f32
    %11 = vector.broadcast %cst_5 : f32 to vector<16x128xf32>
    %12 = arith.addf %11, %10 : vector<16x128xf32>
    %13 = arith.divf %11, %12 : vector<16x128xf32>
    %14 = arith.mulf %7, %13 : vector<16x128xf32>
    %c0_6 = arith.constant 0 : index
    %c0_7 = arith.constant 0 : index
    %15 = vector.load %arg4[%c0_6, %c0_7] : memref<128x1xf32, #tpu.memory_space<vmem>>, vector<128x1xf32>
    %cst_8 = arith.constant dense<0.000000e+00> : vector<16x1xf32>
    %16 = tpu.matmul %14, %15, %cst_8 {dimension_numbers = #tpu.dot_dimension_numbers<[1], [0], [0], [1], [0, 0, 1, 1], [], []>} : vector<16x128xf32>, vector<128x1xf32>, vector<16x1xf32> -> vector<16x1xf32>
    %c0_9 = arith.constant 0 : index
    %c0_10 = arith.constant 0 : index
    %17 = vector.load %arg5[%c0_9, %c0_10] : memref<1x1xf32, #tpu.memory_space<vmem>>, vector<1x1xf32>
    %18 = vector.broadcast %17 : vector<1x1xf32> to vector<16x1xf32>
    %19 = arith.addf %16, %18 : vector<16x1xf32>
    %c0_11 = arith.constant 0 : index
    %c0_12 = arith.constant 0 : index
    %20 = vector.load %arg6[%c0_11, %c0_12] : memref<16x1xf32, #tpu.memory_space<vmem>>, vector<16x1xf32>
    tpu.vector_store %arg6[%c0_11, %c0_12], %19 {strides = array<i32>} : memref<16x1xf32, #tpu.memory_space<vmem>>, vector<16x1xf32>,
    return
  }
  func.func @transform_0(%arg0: i32) -> (i32, i32) {
    %c0_i32 = arith.constant 0 : i32
    %c0_i32_0 = arith.constant 0 : i32
    return %arg0, %c0_i32 : i32, i32
  }
  func.func @transform_1(%arg0: i32) -> (i32, i32) {
    %c0_i32 = arith.constant 0 : i32
    %c0_i32_0 = arith.constant 0 : i32
    %c0_i32_1 = arith.constant 0 : i32
    return %c0_i32, %c0_i32_0 : i32, i32
  }
  func.func @transform_2(%arg0: i32) -> (i32, i32) {
    %c0_i32 = arith.constant 0 : i32
    %c0_i32_0 = arith.constant 0 : i32
    %c0_i32_1 = arith.constant 0 : i32
    return %c0_i32, %c0_i32_0 : i32, i32
  }
  func.func @transform_3(%arg0: i32) -> (i32, i32) {
    %c0_i32 = arith.constant 0 : i32
    %c0_i32_0 = arith.constant 0 : i32
    %c0_i32_1 = arith.constant 0 : i32
    return %c0_i32, %c0_i32_0 : i32, i32
  }
  func.func @transform_4(%arg0: i32) -> (i32, i32) {
    %c0_i32 = arith.constant 0 : i32
    %c0_i32_0 = arith.constant 0 : i32
    %c0_i32_1 = arith.constant 0 : i32
    return %c0_i32, %c0_i32_0 : i32, i32
  }
  func.func @transform_5(%arg0: i32) -> (i32, i32) {
    %c0_i32 = arith.constant 0 : i32
    %c0_i32_0 = arith.constant 0 : i32
    return %arg0, %c0_i32 : i32, i32
  }
}

</mosaic_0001>

<bundles_post_ra>
// kernel: tpu_custom_call.1
= control target key start
LH: loop header
LB: loop body
LE: loop exit
PB: predicated region body
PF: predicated region fallthrough
CT: control target
= control target key end

     0   :  { %s572_s0 = inlined_call_operand.hbm [shape: f32[16,64], index: 0, kind: input, shape index: {}]   ;;  %s573_s1 = inlined_call_operand.vmem [shape: f32[64,256], index: 1, kind: input, shape index: {}]   ;;  %s574_s2 = inlined_call_operand.vmem [shape: f32[1,256], index: 2, kind: input, shape index: {}]   ;;  %s575_s3 = inlined_call_operand.vmem [shape: f32[128,1], index: 3, kind: input, shape index: {}]   ;;  %s576_s4 = inlined_call_operand.<no memory space> [shape: f32[1,1], index: 4, kind: input, shape index: {}]   ;;  %s577_s5 = inlined_call_operand.vmem [shape: f32[16,1], index: 5, kind: output, shape index: {}]  }
   0x1   :  { %v10_v0 = vstv %s576_s4 }
   0x2   :  { %11 = vst [vmem:[#allocation2] sm:$0x1] %v10_v0 }
   0x3   :  { %12 = vsyncpa [#allocation4], 0  ;;  %s418_s20 = smov [#allocation3]   ;;  %s394_s24 = scalar_lea.hbm %s572_s0, 256 }
   0x4   :  { %s18_s21 = sshll.u32 %s418_s20, 4  ;;  %p395_p0 = scmp.ne.s32.totalorder %s572_s0, %s394_s24  ;;  %s19_s21 = int_to_ptr.vmem [resolvable:$true] %s18_s21 }
   0x5   :  { %p398_p1 = scmp.lt.u32.totalorder %s394_s24, %s572_s0 }
   0x7   :  { %p400_p2 = pnand %p398_p1, %p395_p0 }
   0x9   :  { %403 = shalt.err (!%p400_p2)
}
   0xa   :  { %s404_s4 = scalar_lea.vmem %s19_s21, 256  ;;  %p409_p4 = scmp.lt.s32.totalorder %s19_s21, %s19_s21 }
   0xb   :  { %p405_p3 = scmp.ne.s32.totalorder %s19_s21, %s404_s4  ;;  %p410_p5 = scmp.lt.s32.totalorder %s404_s4, %s404_s4 }
   0xd   :  { %p411_p6 = por %p410_p5, %p409_p4 }
   0xf   :  { %p412_p7 = pnand %p411_p6, %p405_p3 }
  0x11   :  { %415 = shalt.err (!%p412_p7)
}
  0x12   :  { %s419_s29 = smov 128   ;;  %s420_s30 = smov 8  }
  0x13   :  { %24 = dma.hbm_to_vmem [thread:$0]  %s572_s0, 256, %s19_s21, [#allocation4], %s419_s29, %s419_s29, %s420_s30  }
  0x14   :  { %416 = dma.done.wait [#allocation4], 256  }
  0x15   :  { %417 = vsyncadd [#allocation4], 4294967040  ;;  %v421_v1 = vmov 0.0   ;;  %v39_v2 = vld [vmem:[%s573_s1 + $0x8] sm:$0xff]  ;;  %v41_v3 = vld [vmem:[%s573_s1 + $0x18] sm:$0xff]  ;;  %vm66_vm0 = vcmask 523264   ;;  %v56_v52 = vlaneseq }
  0x16   :  { %137 = vmatprep.mubr.f32.mxu0 %v421_v1  ;;  %v38_v4 = vld [vmem:[%s573_s1] sm:$0xff]  ;;  %v330_v5 = vpack.c.bf16 %v41_v3, %v39_v2  ;;  %v40_v6 = vld [vmem:[%s573_s1 + $0x10] sm:$0xff]  ;;  %v43_v7 = vld [vmem:[%s573_s1 + $0x28] sm:$0xff]  ;;  %vm264_vm1 = vcmask 7168  }
  0x17   :  { %v45_v8 = vld [vmem:[%s573_s1 + $0x38] sm:$0xff]  ;;  %v332_v9 = vpack.c.bf16 %v40_v6, %v38_v4  ;;  %v42_v11 = vld [vmem:[%s573_s1 + $0x20] sm:$0xff]  ;;  %v44_v12 = vld [vmem:[%s573_s1 + $0x30] sm:$0xff]  ;;  %v57_v53 = vshrl.u32 %v56_v52, 7 }
  0x18   :  { %v334_v10 = vpack.c.bf16 %v45_v8, %v43_v7  ;;  %v47_v13 = vld [vmem:[%s573_s1 + $0x48] sm:$0xff]  ;;  %331 = vmatprep.subr.bf16.mxu0 %v330_v5  ;;  %v49_v14 = vld [vmem:[%s573_s1 + $0x58] sm:$0xff]  ;;  %v336_v15 = vpack.c.bf16 %v44_v12, %v42_v11  ;;  %v46_v17 = vld [vmem:[%s573_s1 + $0x40] sm:$0xff] }
  0x19   :  { %333 = vmatpush1.bf16.msra.mxu0 %v332_v9  ;;  %v338_v16 = vpack.c.bf16 %v49_v14, %v47_v13  ;;  %v48_v18 = vld [vmem:[%s573_s1 + $0x50] sm:$0xff]  ;;  %v51_v19 = vld [vmem:[%s573_s1 + $0x68] sm:$0xff]  ;;  %v53_v20 = vld [vmem:[%s573_s1 + $0x78] sm:$0xff]  ;;  %v62_v54 = vsub.s32 1, %v57_v53  ;;  %v58_v63 = vsub.s32 0, %v57_v53 }
  0x1a   :  { %335 = vmatprep.subr.bf16.mxu0 %v334_v10  ;;  %v340_v21 = vpack.c.bf16 %v48_v18, %v46_v17  ;;  %v342_v22 = vpack.c.bf16 %v53_v20, %v51_v19  ;;  %v50_v23 = vld [vmem:[%s573_s1 + $0x60] sm:$0xff]  ;;  %v52_v24 = vld [vmem:[%s573_s1 + $0x70] sm:$0xff]  ;;  %v167_v29 = vld [vmem:[%s575_s3 + $0x8] sm:$0xff] }
  0x1b   :  { %v344_v25 = vpack.c.bf16 %v52_v24, %v50_v23  ;;  %v36_v26 = vld [vmem:[#allocation3] sm:$0xff]  ;;  %v37_v27 = vld [vmem:[#allocation3 + $0x8] sm:$0xff]  ;;  %v169_v32 = vld [vmem:[%s575_s3 + $0x18] sm:$0xff] }
  0x1c   :  { %v166_v28 = vld [vmem:[%s575_s3] sm:$0xff]  ;;  %v168_v31 = vld [vmem:[%s575_s3 + $0x10] sm:$0xff]  ;;  %v171_v35 = vld [vmem:[%s575_s3 + $0x28] sm:$0xff] }
  0x1d   :  { %337 = vmatpush1.bf16.msra.mxu0 %v336_v15  ;;  %v346_v30 = vpack.c.bf16 %v167_v29, %v166_v28  ;;  %v350_v33 = vpack.c.bf16 %v169_v32, %v168_v31  ;;  %v170_v34 = vld [vmem:[%s575_s3 + $0x20] sm:$0xff]  ;;  %v172_v37 = vld [vmem:[%s575_s3 + $0x30] sm:$0xff]  ;;  %v173_v38 = vld [vmem:[%s575_s3 + $0x38] sm:$0xff] }
  0x1e   :  { %339 = vmatprep.subr.bf16.mxu0 %v338_v16  ;;  %v354_v36 = vpack.c.bf16 %v171_v35, %v170_v34  ;;  %v358_v39 = vpack.c.bf16 %v173_v38, %v172_v37  ;;  %v174_v40 = vld [vmem:[%s575_s3 + $0x40] sm:$0xff]  ;;  %v175_v41 = vld [vmem:[%s575_s3 + $0x48] sm:$0xff]  ;;  %v176_v43 = vld [vmem:[%s575_s3 + $0x50] sm:$0xff] }
  0x1f   :  { %347 = vmatprep.subr.bf16.mxu1 %v346_v30  ;;  %v362_v42 = vpack.c.bf16 %v175_v41, %v174_v40  ;;  %v177_v44 = vld [vmem:[%s575_s3 + $0x58] sm:$0xff]  ;;  %v178_v46 = vld [vmem:[%s575_s3 + $0x60] sm:$0xff]  ;;  %v179_v47 = vld [vmem:[%s575_s3 + $0x68] sm:$0xff] }
  0x20   :  { %349 = vmatpush3.bf16.msra.mxu1 %v346_v30  ;;  %v366_v45 = vpack.c.bf16 %v177_v44, %v176_v43  ;;  %v180_v48 = vld [vmem:[%s575_s3 + $0x70] sm:$0xff]  ;;  %v370_v49 = vpack.c.bf16 %v179_v47, %v178_v46  ;;  %v181_v50 = vld [vmem:[%s575_s3 + $0x78] sm:$0xff]  ;;  %v54_v55 = vld [vmem:[%s574_s2] sm:$0x3] }
  0x21   :  { %341 = vmatpush1.bf16.msra.mxu0 %v340_v21  ;;  %351 = vmatprep.subr.bf16.mxu1 %v350_v33  ;;  %v374_v51 = vpack.c.bf16 %v181_v50, %v180_v48  ;;  %v63_v56 = vrot.slane %v54_v55, %v62_v54  ;;  %v59_v2 = vrot.slane %v54_v55, %v58_v63  ;;  %v276_v15 = vld [vmem:[#allocation2] ss:$0 sm:$0xff] }
  0x22   :  { %343 = vmatprep.subr.bf16.mxu0 %v342_v22 }
  0x24   :  { %353 = vmatpush3.bf16.msra.mxu1 %v350_v33 }
  0x25   :  { %345 = vmatpush1.bf16.msra.mxu0 %v344_v25  ;;  %355 = vmatprep.subr.bf16.mxu1 %v354_v36 }
  0x28   :  { %272 = vmatmul.mubr.msk.f32.vlgmr.msra.gmra.mrb[0].mxu0 %vm66_vm0, %v36_v26  ;;  %357 = vmatpush3.bf16.msra.mxu1 %v354_v36 }
  0x29   :  { %143 = vmatprep.mubr.f32.mxu0 %v421_v1  ;;  %359 = vmatprep.subr.bf16.mxu1 %v358_v39 }
  0x2c   :  { %273 = vmatmul.mubr.msk.f32.gmra.mrb[2].mxu0 %vm66_vm0, %v37_v27  ;;  %361 = vmatpush3.bf16.msra.mxu1 %v358_v39 }
  0x2d   :  { %363 = vmatprep.subr.bf16.mxu1 %v362_v42 }
  0x30   :  { %365 = vmatpush3.bf16.msra.mxu1 %v362_v42 }
  0x31   :  { %367 = vmatprep.subr.bf16.mxu1 %v366_v45 }
  0x34   :  { %369 = vmatpush3.bf16.msra.mxu1 %v366_v45 }
  0x35   :  { %371 = vmatprep.subr.bf16.mxu1 %v370_v49 }
  0x38   :  { %373 = vmatpush3.bf16.msra.mxu1 %v370_v49 }
  0x39   :  { %375 = vmatprep.subr.bf16.mxu1 %v374_v51 }
  0x3c   :  { %377 = vmatpush3.bf16.msra.mxu1 %v374_v51 }
  0xfb   :  { %v139_v57 = vpop.f32.mrb[0].mxu0 }
  0xfc   :  { %v141_v58 = vpop.f32.mrb[1].mxu0  ;;  %v140_v3 = vadd.f32 %v139_v57, %v59_v2 }
  0xfd   :  { %v142_v59 = vadd.f32 %v141_v58, %v63_v56 }
  0xff   :  { %v274_v60 = vmul.f32 -1.442695, %v142_v59  ;;  %v145_v61 = vpop.f32.mrb[2].mxu0 }
 0x100   :  { %v147_v62 = vpop.f32.mrb[3].mxu0  ;;  %v146_v6 = vadd.f32 %v145_v61, %v59_v2 }
 0x101   :  { %382 = vpow2.f32 %v274_v60  ;;  %v148_v0 = vadd.f32 %v147_v62, %v63_v56 }
 0x103   :  { %v275_v1 = vmul.f32 -1.442695, %v148_v0 }
 0x105   :  { %384 = vpow2.f32 %v275_v1 }
 0x106   :  { %386 = vtanh.f32 %v140_v3 }
 0x10b   :  { %v383_v4 = vpop.eup %382 }
 0x10c   :  { %v158_v5 = vadd.f32 1.0, %v383_v4 }
 0x10e   :  { %388 = vrcp.f32 %v158_v5 }
 0x10f   :  { %v385_v7 = vpop.eup %384  ;;  %390 = vtanh.f32 %v146_v6 }
 0x110   :  { %v159_v8 = vadd.f32 1.0, %v385_v7  ;;  %v387_v9 = vpop.eup %386 }
 0x112   :  { %392 = vrcp.f32 %v159_v8 }
 0x118   :  { %v389_v10 = vpop.eup %388 }
 0x119   :  { %v164_v11 = vmul.f32 %v389_v10, %v387_v9  ;;  %v391_v12 = vpop.eup %390 }
 0x11b   :  { %327 = vmatprep.mubr.f32.mxu1 %v164_v11 }
 0x11c   :  { %v393_v13 = vpop.eup %392 }
 0x11d   :  { %v165_v14 = vmul.f32 %v393_v13, %v391_v12 }
 0x11f   :  { %328 = vmatmul.mubr.f32.vlgmr.msra.gmra.mrb[0].mxu1 %v165_v14 }
 0x1f2   :  { %v329_v16 = vpop.f32.mrb[0].mxu1 }
 0x1f3   :  { %v261_v17 = vadd.f32 %v329_v16, %v276_v15  ;;  %v255_v18 = vpop.f32.mrb[1].mxu1 }
 0x1f4   :  { %v256_v19 = vadd.f32 %v276_v15, %v255_v18 }
 0x1f5   :  { %266 = vst.msk [vmem:[%s577_s5 + $0x8] sm:$0xff] %vm264_vm1, %v261_v17 }
 0x1f6   :  { %265 = vst.msk [vmem:[%s577_s5] sm:$0xff] %vm264_vm1, %v256_v19 }
 0x1f7   :  { %271 = vsyncpa [#allocation4], 1 }

</bundles_post_ra>
